<compile_context>
chip_gen: v7x
topology: tpu7x:2x2x1
jax: 0.10.0
libtpu: 0.0.40
codegen_flags: <defaults>
</compile_context>

<pallas_src>
import math
import jax
import jax.numpy as jnp
from jax.experimental import pallas as pl
from jax.experimental.pallas import tpu as pltpu  # noqa: F401  (kept for tiled follow-up)

EPS = 1e-5  # torch.nn.BatchNorm1d default eps


def _round_up(v, m):
    return ((v + m - 1) // m) * m


def _fold_bn(gamma, beta, rmean, rvar):
    """Eval-mode BN -> (scale, shift) so that BN(x) == x * scale + shift."""
    scale = gamma * jax.lax.rsqrt(rvar + EPS)
    shift = beta - rmean * scale
    return scale, shift


# ---------------------------------------------------------------------------
# Parameter preparation: fold BN, split/merge matmuls, pack small vectors
# ---------------------------------------------------------------------------
def prepare_fused(params, gcn_size, linear_size, num_cat, slice_list,
                  mxu_dtype=jnp.float32):
    n_gcn = len(gcn_size) - 1
    B = len(slice_list)
    N = sum(slice_list)

    # ---- lane-dense vector slab: one row per small per-layer vector ----------
    vec_rows = []

    def add_vec(v):
        vec_rows.append(jnp.ravel(jnp.asarray(v, jnp.float32)))

    mat_args = []  # weight matrices (MXU operands), in kernel consumption order

    # mean pooling as a matmul: mean_w[b, i] = 1/n_b if node i belongs to graph b
    rows, off = [], 0
    for n in slice_list:
        rows.append(jnp.zeros((N,), jnp.float32).at[off:off + n].set(1.0 / n))
        off += n
    mean_w = jnp.stack(rows, axis=0).astype(mxu_dtype)     # [B, N]

    # GCN layers: W and Wskip kept separate (no intra-vreg slicing in-kernel);
    # post-ReLU eval-BN folded into (scale, shift) rows of the slab.
    gcn_fout = []
    for (W, Ws, b, gamma, beta, rmean, rvar) in params["gcn"]:
        scale, shift = _fold_bn(gamma, beta, rmean, rvar)
        mat_args += [W.astype(mxu_dtype), Ws.astype(mxu_dtype)]
        add_vec(b)
        add_vec(scale)
        add_vec(shift)
        gcn_fout.append(W.shape[1])

    # hidden MLP layers: BN folded into the following Linear (then ReLU).
    lin = params["linear"]
    n_hidden = len(lin) - 1
    assert n_hidden >= 1, "GCN module requires len(linear_size) >= 2"
    mlp_fout = []
    for idx, (gamma, beta, rmean, rvar, W, b) in enumerate(lin[:-1]):
        scale, shift = _fold_bn(gamma, beta, rmean, rvar)
        Wf = W * scale[0][:, None]                          # [fin, fout]
        bf = b + shift @ W                                  # [1, fout]
        if idx == 0:
            # split the first layer's weight so the kernel never concatenates
            # [max_x | mean_x] along lanes
            f_tot = Wf.shape[0] // 2
            mat_args += [Wf[:f_tot].astype(mxu_dtype),      # acts on max_x
                         Wf[f_tot:].astype(mxu_dtype)]      # acts on mean_x
        else:
            mat_args.append(Wf.astype(mxu_dtype))
        add_vec(bf)
        mlp_fout.append(Wf.shape[1])

    # head: fingerprint = BN(z) kept explicit; output + category matmuls merged
    gamma, beta, rmean, rvar, W_out, b_out = lin[-1]
    hscale, hshift = _fold_bn(gamma, beta, rmean, rvar)
    W_cat, b_cat = params["cat"]
    W_oc = jnp.concatenate([W_out, W_cat], axis=1)          # [Ffp, Dout+Dcat]
    b_oc = jnp.concatenate([b_out, b_cat], axis=1)          # [1, Dout+Dcat]
    mat_args.append(W_oc.astype(mxu_dtype))
    add_vec(hscale)
    add_vec(hshift)
    add_vec(b_oc)

    # pack all small vectors into one [rows, vlanes] slab (single DMA / buffer)
    vlanes = _round_up(max(int(v.shape[0]) for v in vec_rows), 128)
    n_rows = _round_up(len(vec_rows), 8)
    slab = jnp.zeros((n_rows, vlanes), jnp.float32)
    for i, v in enumerate(vec_rows):
        slab = slab.at[i, :v.shape[0]].set(v)

    d_out, d_cat, d_fp = linear_size[-1], num_cat, linear_size[-2]
    segments, off = [], 0
    for n in slice_list:
        segments.append((off, n))
        off += n

    cfg = dict(
        n_gcn=n_gcn,
        gcn_fout=tuple(gcn_fout),
        n_hidden=n_hidden,
        mlp_fout=tuple(mlp_fout),
        segments=tuple(segments),
        B=B,
        d_out=d_out,
        d_cat=d_cat,
        d_fp=d_fp,
        b_pad=_round_up(max(B, 1), 8),
        w_pad=_round_up(d_out + d_cat + d_fp, 128),
        mxu_dtype=mxu_dtype,
    )
    tail_args = [mean_w, slab] + mat_args
    return tail_args, cfg


# ---------------------------------------------------------------------------
# The single fused kernel (factory closes over static configuration)
# ---------------------------------------------------------------------------
def make_fused_kernel(cfg):
    n_gcn = cfg["n_gcn"]
    gcn_fout = cfg["gcn_fout"]
    n_hidden = cfg["n_hidden"]
    mlp_fout = cfg["mlp_fout"]
    segments = cfg["segments"]
    B = cfg["B"]
    d_out, d_cat, d_fp = cfg["d_out"], cfg["d_cat"], cfg["d_fp"]
    b_pad, w_pad = cfg["b_pad"], cfg["w_pad"]
    mxu_dtype = cfg["mxu_dtype"]

    def kernel(*refs):
        it = iter(refs)
        x_ref = next(it)
        adj_ref = next(it) if n_gcn else None
        meanw_ref = next(it)
        vec_ref = next(it)                                   # packed vector slab
        gcn_w = [(next(it), next(it)) for _ in range(n_gcn)]  # (W, Wskip) per layer
        w1_max_ref = next(it)                                # first MLP layer, max half
        w1_mean_ref = next(it)                               # first MLP layer, mean half
        mlp_w = [next(it) for _ in range(n_hidden - 1)]      # remaining folded MLP weights
        woc_ref = next(it)                                   # merged [W_out | W_cat]
        out_ref = next(it)

        def vrow(row, length):
            # static (1, length) slice of the packed vector slab
            return vec_ref[row:row + 1, :length]

        def mxu(a):
            # cast activation for the MXU only; identity when mxu_dtype == f32
            return a.astype(mxu_dtype)

        r = 0
        h = x_ref[...]

        # --- GraphConvolutionSkip stack: relu((adj@h)@W + b + h@Ws) then BN -----
        if n_gcn:
            adj = adj_ref[...].astype(mxu_dtype)
            embs = []
            for li, (w_ref, ws_ref) in enumerate(gcn_w):
                fout = gcn_fout[li]
                hm = mxu(h)
                ah = jnp.dot(adj, hm, preferred_element_type=jnp.float32)
                g = (jnp.dot(mxu(ah), w_ref[...], preferred_element_type=jnp.float32)
                     + jnp.dot(hm, ws_ref[...], preferred_element_type=jnp.float32)
                     + vrow(r, fout))
                g = jnp.maximum(g, 0.0)                      # ReLU (f32, VPU)
                h = g * vrow(r + 1, fout) + vrow(r + 2, fout)  # folded eval-BN
                r += 3
                embs.append(h)
            emb = embs[0] if n_gcn == 1 else jnp.concatenate(embs, axis=1)
        else:
            emb = h

        # --- per-graph pooling ---------------------------------------------------
        mean_x = jnp.dot(meanw_ref[...], mxu(emb), preferred_element_type=jnp.float32)
        max_rows = [jnp.max(emb[o:o + n, :], axis=0, keepdims=True)
                    for (o, n) in segments]
        max_x = max_rows[0] if B == 1 else jnp.concatenate(max_rows, axis=0)

        # --- first hidden MLP layer: split weight, no [max|mean] lane concat -----
        z = (jnp.dot(mxu(max_x), w1_max_ref[...], preferred_element_type=jnp.float32)
             + jnp.dot(mxu(mean_x), w1_mean_ref[...], preferred_element_type=jnp.float32)
             + vrow(r, mlp_fout[0]))
        z = jnp.maximum(z, 0.0)
        r += 1

        # --- remaining hidden layers (BN folded) + ReLU; dropout = identity ------
        for hi, wf_ref in enumerate(mlp_w):
            z = jnp.dot(mxu(z), wf_ref[...],
                        preferred_element_type=jnp.float32) + vrow(r, mlp_fout[hi + 1])
            z = jnp.maximum(z, 0.0)
            r += 1

        # --- head: fingerprint = BN(z); [x_out | out_class] in one matmul --------
        fp = z * vrow(r, d_fp) + vrow(r + 1, d_fp)           # [B, d_fp]
        yoc = jnp.dot(mxu(fp), woc_ref[...],
                      preferred_element_type=jnp.float32) + vrow(r + 2, d_out + d_cat)

        # --- single lane-dense packed store: [x_out | out_class | fp | 0...] -----
        used = d_out + d_cat + d_fp
        pieces = [yoc, fp]
        if w_pad > used:
            pieces.append(jnp.zeros((B, w_pad - used), jnp.float32))
        packed = jnp.concatenate(pieces, axis=1)
        if b_pad > B:
            packed = jnp.concatenate(
                [packed, jnp.zeros((b_pad - B, w_pad), jnp.float32)], axis=0)
        out_ref[...] = packed

    return kernel


# ---------------------------------------------------------------------------
# Full forward (mirrors GCN.forward), one pallas_call total
# ---------------------------------------------------------------------------
def gcn_forward(x, adj, slice_list, params, gcn_size, linear_size, num_cat,
                mxu_dtype=jnp.float32):
    tail_args, cfg = prepare_fused(params, gcn_size, linear_size, num_cat,
                                   slice_list, mxu_dtype)
    kernel = make_fused_kernel(cfg)

    args = [x]
    if cfg["n_gcn"]:
        args.append(adj.astype(mxu_dtype))
    args += tail_args

    # Whole-array fused call: working set is a few hundred KiB, no vmem_limit
    # override, no grid (per-step overhead would dominate at this size).
    packed = pl.pallas_call(
        kernel,
        out_shape=jax.ShapeDtypeStruct((cfg["b_pad"], cfg["w_pad"]), jnp.float32),
    )(*args)

    B, d_out, d_cat, d_fp = cfg["B"], cfg["d_out"], cfg["d_cat"], cfg["d_fp"]
    x_out = packed[:B, :d_out]
    out_class = packed[:B, d_out:d_out + d_cat]
    fingerprint = packed[:B, d_out + d_cat:d_out + d_cat + d_fp]
    return x_out, out_class, fingerprint


# ---------------------------------------------------------------------------
# Pure-JAX reference (unfused, matches the PyTorch module math) for checking
# ---------------------------------------------------------------------------
def reference_forward(x, adj, slice_list, params):
    embs = []
    h = x
    for (W, Ws, b, gamma, beta, rmean, rvar) in params["gcn"]:
        out = adj @ (h @ W) + b + h @ Ws
        out = jnp.maximum(out, 0.0)
        out = (out - rmean) * jax.lax.rsqrt(rvar + EPS) * gamma + beta
        embs.append(out)
        h = out
    emb = jnp.concatenate(embs, axis=1) if embs else x

    maxs, means, off = [], [], 0
    for n in slice_list:
        seg = emb[off:off + n]
        maxs.append(seg.max(axis=0))
        means.append(seg.mean(axis=0))
        off += n
    z = jnp.concatenate([jnp.stack(maxs, 0), jnp.stack(means, 0)], axis=1)

    lin = params["linear"]
    for (gamma, beta, rmean, rvar, W, b) in lin[:-1]:
        zn = (z - rmean) * jax.lax.rsqrt(rvar + EPS) * gamma + beta
        z = jnp.maximum(zn @ W + b, 0.0)
    gamma, beta, rmean, rvar, W_out, b_out = lin[-1]
    fp = (z - rmean) * jax.lax.rsqrt(rvar + EPS) * gamma + beta
    W_cat, b_cat = params["cat"]
    return fp @ W_out + b_out, fp @ W_cat + b_cat, fp


# ---------------------------------------------------------------------------
# Deterministic parameter init (shapes per module __init__; synthetic values)
# ---------------------------------------------------------------------------
def init_params(key, gcn_size, linear_size, num_cat):
    params = {"gcn": [], "linear": []}

    for k in range(len(gcn_size) - 1):
        fin, fout = gcn_size[k], gcn_size[k + 1]
        stdv = 1.0 / math.sqrt(fout)
        key, k1, k2, k3, k4, k5, k6, k7 = jax.random.split(key, 8)
        W = jax.random.uniform(k1, (fin, fout), minval=0.0, maxval=stdv)
        Ws = jax.random.uniform(k2, (fin, fout), minval=0.0, maxval=stdv)
        b = jax.random.uniform(k3, (1, fout), minval=-stdv, maxval=stdv)
        gamma = jax.random.uniform(k4, (1, fout), minval=0.5, maxval=1.5)
        beta = jax.random.uniform(k5, (1, fout), minval=-0.1, maxval=0.1)
        rmean = jax.random.uniform(k6, (1, fout), minval=-0.1, maxval=0.1)
        rvar = jax.random.uniform(k7, (1, fout), minval=0.5, maxval=1.5)
        params["gcn"].append((W, Ws, b, gamma, beta, rmean, rvar))

    embeddings = sum(gcn_size[1:]) if len(gcn_size) > 1 else gcn_size[0]
    dims = [2 * embeddings] + list(linear_size)
    for i in range(len(dims) - 1):
        fin, fout = dims[i], dims[i + 1]
        stdv = 1.0 / math.sqrt(fin)
        key, k1, k2, k3, k4, k5, k6 = jax.random.split(key, 7)
        gamma = jax.random.uniform(k1, (1, fin), minval=0.5, maxval=1.5)
        beta = jax.random.uniform(k2, (1, fin), minval=-0.1, maxval=0.1)
        rmean = jax.random.uniform(k3, (1, fin), minval=-0.1, maxval=0.1)
        rvar = jax.random.uniform(k4, (1, fin), minval=0.5, maxval=1.5)
        W = jax.random.uniform(k5, (fin, fout), minval=-stdv, maxval=stdv)  # Linear W^T
        b = jax.random.uniform(k6, (1, fout), minval=-stdv, maxval=stdv)
        params["linear"].append((gamma, beta, rmean, rvar, W, b))

    fin = linear_size[-2]
    stdv = 1.0 / math.sqrt(fin)
    key, k1, k2 = jax.random.split(key, 3)
    params["cat"] = (
        jax.random.uniform(k1, (fin, num_cat), minval=-stdv, maxval=stdv),
        jax.random.uniform(k2, (1, num_cat), minval=-stdv, maxval=stdv),
    )
    return params


def build_norm_adj(key, slice_list):
    """Block-diagonal (D+I)^-1/2 (A+I) (D+I)^-1/2 with random symmetric blocks."""
    N = sum(slice_list)
    A = jnp.zeros((N, N), jnp.float32)
    off = 0
    for n in slice_list:
        key, sub = jax.random.split(key)
        blk = (jax.random.uniform(sub, (n, n)) > 0.6).astype(jnp.float32)
        blk = jnp.maximum(blk, blk.T)
        A = A.at[off:off + n, off:off + n].set(blk)
        off += n
    A_hat = A + jnp.eye(N, dtype=jnp.float32)
    d_inv_sqrt = 1.0 / jnp.sqrt(jnp.sum(A_hat, axis=1))
    return A_hat * d_inv_sqrt[:, None] * d_inv_sqrt[None, :]


def _check(name, got, want, atol=2e-2, rtol=2e-2):
    if not bool(jnp.allclose(got, want, atol=atol, rtol=rtol)):
        err = float(jnp.max(jnp.abs(got - want)))
        raise AssertionError(f"{name} mismatch: max abs err {err:.3e}")


if __name__ == "__main__":
    gcn_size = [16, 32, 32]        # input features 16, two GCN layers of width 32
    linear_size = [64, 32, 16]
    num_cat = 5
    slice_list = [8, 8]            # 2 molecules, 8 nodes each
    N = sum(slice_list)

    key = jax.random.PRNGKey(0)
    key, kx, ka, kp = jax.random.split(key, 4)
    x = jax.random.normal(kx, (N, gcn_size[0]), dtype=jnp.float32)
    adj = build_norm_adj(ka, slice_list)
    params = init_params(kp, gcn_size, linear_size, num_cat)

    # Default f32 MXU operands; pass mxu_dtype=jnp.bfloat16 on v6e/v7x at larger N
    # (re-validate tolerance when doing so).
    x_out, out_class, fingerprint = gcn_forward(
        x, adj, slice_list, params, gcn_size, linear_size, num_cat)
    jax.block_until_ready((x_out, out_class, fingerprint))

    assert x_out.shape == (len(slice_list), linear_size[-1])
    assert out_class.shape == (len(slice_list), num_cat)
    assert fingerprint.shape == (len(slice_list), linear_size[-2])

    ref_x, ref_c, ref_fp = reference_forward(x, adj, slice_list, params)
    _check("x_out", x_out, ref_x)
    _check("out_class", out_class, ref_c)
    _check("fingerprint", fingerprint, ref_fp)

    print("KERNEL_OK")
</pallas_src>

<mosaic_0001>
module attributes {stable_mosaic.version = 11 : i64} {
  func.func @kernel(%arg0: memref<16x16xf32, #tpu.memory_space<vmem>>, %arg1: memref<16x16xf32, #tpu.memory_space<vmem>>, %arg2: memref<2x16xf32, #tpu.memory_space<vmem>>, %arg3: memref<16x128xf32, #tpu.memory_space<vmem>>, %arg4: memref<16x32xf32, #tpu.memory_space<vmem>>, %arg5: memref<16x32xf32, #tpu.memory_space<vmem>>, %arg6: memref<32x32xf32, #tpu.memory_space<vmem>>, %arg7: memref<32x32xf32, #tpu.memory_space<vmem>>, %arg8: memref<64x64xf32, #tpu.memory_space<vmem>>, %arg9: memref<64x64xf32, #tpu.memory_space<vmem>>, %arg10: memref<64x32xf32, #tpu.memory_space<vmem>>, %arg11: memref<32x21xf32, #tpu.memory_space<vmem>>, %arg12: memref<8x128xf32, #tpu.memory_space<vmem>>) attributes {dimension_semantics = [], scalar_prefetch = 0 : i64, scratch_operands = 0 : i64, tpu.core_type = #tpu.core_type<tc>} {
    %c0 = arith.constant 0 : index
    %c0_0 = arith.constant 0 : index
    %0 = vector.load %arg0[%c0, %c0_0] : memref<16x16xf32, #tpu.memory_space<vmem>>, vector<16x16xf32>
    %c0_1 = arith.constant 0 : index
    %c0_2 = arith.constant 0 : index
    %1 = vector.load %arg1[%c0_1, %c0_2] : memref<16x16xf32, #tpu.memory_space<vmem>>, vector<16x16xf32>
    %cst = arith.constant dense<0.000000e+00> : vector<16x16xf32>
    %2 = tpu.matmul %1, %0, %cst {dimension_numbers = #tpu.dot_dimension_numbers<[1], [0], [0], [1], [0, 0, 1, 1], [], []>} : vector<16x16xf32>, vector<16x16xf32>, vector<16x16xf32> -> vector<16x16xf32>
    %c0_3 = arith.constant 0 : index
    %c0_4 = arith.constant 0 : index
    %3 = vector.load %arg4[%c0_3, %c0_4] : memref<16x32xf32, #tpu.memory_space<vmem>>, vector<16x32xf32>
    %cst_5 = arith.constant dense<0.000000e+00> : vector<16x32xf32>
    %4 = tpu.matmul %2, %3, %cst_5 {dimension_numbers = #tpu.dot_dimension_numbers<[1], [0], [0], [1], [0, 0, 1, 1], [], []>} : vector<16x16xf32>, vector<16x32xf32>, vector<16x32xf32> -> vector<16x32xf32>
    %c0_6 = arith.constant 0 : index
    %c0_7 = arith.constant 0 : index
    %5 = vector.load %arg5[%c0_6, %c0_7] : memref<16x32xf32, #tpu.memory_space<vmem>>, vector<16x32xf32>
    %cst_8 = arith.constant dense<0.000000e+00> : vector<16x32xf32>
    %6 = tpu.matmul %0, %5, %cst_8 {dimension_numbers = #tpu.dot_dimension_numbers<[1], [0], [0], [1], [0, 0, 1, 1], [], []>} : vector<16x16xf32>, vector<16x32xf32>, vector<16x32xf32> -> vector<16x32xf32>
    %7 = arith.addf %4, %6 : vector<16x32xf32>
    %c0_9 = arith.constant 0 : index
    %c0_10 = arith.constant 0 : index
    %8 = vector.load %arg3[%c0_9, %c0_10] : memref<16x128xf32, #tpu.memory_space<vmem>>, vector<1x32xf32>
    %9 = vector.broadcast %8 : vector<1x32xf32> to vector<16x32xf32>
    %10 = arith.addf %7, %9 : vector<16x32xf32>
    %cst_11 = arith.constant 0.000000e+00 : f32
    %11 = vector.broadcast %cst_11 : f32 to vector<16x32xf32>
    %12 = arith.maximumf %10, %11 : vector<16x32xf32>
    %c1 = arith.constant 1 : index
    %c0_12 = arith.constant 0 : index
    %13 = vector.load %arg3[%c1, %c0_12] : memref<16x128xf32, #tpu.memory_space<vmem>>, vector<1x32xf32>
    %14 = vector.broadcast %13 : vector<1x32xf32> to vector<16x32xf32>
    %15 = arith.mulf %12, %14 : vector<16x32xf32>
    %c2 = arith.constant 2 : index
    %c0_13 = arith.constant 0 : index
    %16 = vector.load %arg3[%c2, %c0_13] : memref<16x128xf32, #tpu.memory_space<vmem>>, vector<1x32xf32>
    %17 = vector.broadcast %16 : vector<1x32xf32> to vector<16x32xf32>
    %18 = arith.addf %15, %17 : vector<16x32xf32>
    %cst_14 = arith.constant dense<0.000000e+00> : vector<16x32xf32>
    %19 = tpu.matmul %1, %18, %cst_14 {dimension_numbers = #tpu.dot_dimension_numbers<[1], [0], [0], [1], [0, 0, 1, 1], [], []>} : vector<16x16xf32>, vector<16x32xf32>, vector<16x32xf32> -> vector<16x32xf32>
    %c0_15 = arith.constant 0 : index
    %c0_16 = arith.constant 0 : index
    %20 = vector.load %arg6[%c0_15, %c0_16] : memref<32x32xf32, #tpu.memory_space<vmem>>, vector<32x32xf32>
    %cst_17 = arith.constant dense<0.000000e+00> : vector<16x32xf32>
    %21 = tpu.matmul %19, %20, %cst_17 {dimension_numbers = #tpu.dot_dimension_numbers<[1], [0], [0], [1], [0, 0, 1, 1], [], []>} : vector<16x32xf32>, vector<32x32xf32>, vector<16x32xf32> -> vector<16x32xf32>
    %c0_18 = arith.constant 0 : index
    %c0_19 = arith.constant 0 : index
    %22 = vector.load %arg7[%c0_18, %c0_19] : memref<32x32xf32, #tpu.memory_space<vmem>>, vector<32x32xf32>
    %cst_20 = arith.constant dense<0.000000e+00> : vector<16x32xf32>
    %23 = tpu.matmul %18, %22, %cst_20 {dimension_numbers = #tpu.dot_dimension_numbers<[1], [0], [0], [1], [0, 0, 1, 1], [], []>} : vector<16x32xf32>, vector<32x32xf32>, vector<16x32xf32> -> vector<16x32xf32>
    %24 = arith.addf %21, %23 : vector<16x32xf32>
    %c3 = arith.constant 3 : index
    %c0_21 = arith.constant 0 : index
    %25 = vector.load %arg3[%c3, %c0_21] : memref<16x128xf32, #tpu.memory_space<vmem>>, vector<1x32xf32>
    %26 = vector.broadcast %25 : vector<1x32xf32> to vector<16x32xf32>
    %27 = arith.addf %24, %26 : vector<16x32xf32>
    %cst_22 = arith.constant 0.000000e+00 : f32
    %28 = vector.broadcast %cst_22 : f32 to vector<16x32xf32>
    %29 = arith.maximumf %27, %28 : vector<16x32xf32>
    %c4 = arith.constant 4 : index
    %c0_23 = arith.constant 0 : index
    %30 = vector.load %arg3[%c4, %c0_23] : memref<16x128xf32, #tpu.memory_space<vmem>>, vector<1x32xf32>
    %31 = vector.broadcast %30 : vector<1x32xf32> to vector<16x32xf32>
    %32 = arith.mulf %29, %31 : vector<16x32xf32>
    %c5 = arith.constant 5 : index
    %c0_24 = arith.constant 0 : index
    %33 = vector.load %arg3[%c5, %c0_24] : memref<16x128xf32, #tpu.memory_space<vmem>>, vector<1x32xf32>
    %34 = vector.broadcast %33 : vector<1x32xf32> to vector<16x32xf32>
    %35 = arith.addf %32, %34 : vector<16x32xf32>
    %36 = tpu.concatenate %18, %35 in 1 : vector<16x32xf32>, vector<16x32xf32> -> vector<16x64xf32>
    %c0_25 = arith.constant 0 : index
    %c0_26 = arith.constant 0 : index
    %37 = vector.load %arg2[%c0_25, %c0_26] : memref<2x16xf32, #tpu.memory_space<vmem>>, vector<2x16xf32>
    %cst_27 = arith.constant dense<0.000000e+00> : vector<2x64xf32>
    %38 = tpu.matmul %37, %36, %cst_27 {dimension_numbers = #tpu.dot_dimension_numbers<[1], [0], [0], [1], [0, 0, 1, 1], [], []>} : vector<2x16xf32>, vector<16x64xf32>, vector<2x64xf32> -> vector<2x64xf32>
    %39 = vector.extract_strided_slice %36 {offsets = [0, 0], sizes = [8, 64], strides = [1, 1]} : vector<16x64xf32> to vector<8x64xf32>
    %cst_28 = arith.constant dense<0xFF800000> : vector<64xf32>
    %40 = vector.multi_reduction <maximumf>, %39, %cst_28 [0] : vector<8x64xf32> to vector<64xf32>
    %41 = vector.shape_cast %40 : vector<64xf32> to vector<1x64xf32>
    %42 = vector.extract_strided_slice %36 {offsets = [8, 0], sizes = [8, 64], strides = [1, 1]} : vector<16x64xf32> to vector<8x64xf32>
    %cst_29 = arith.constant dense<0xFF800000> : vector<64xf32>
    %43 = vector.multi_reduction <maximumf>, %42, %cst_29 [0] : vector<8x64xf32> to vector<64xf32>
    %44 = vector.shape_cast %43 : vector<64xf32> to vector<1x64xf32>
    %45 = tpu.concatenate %41, %44 in 0 : vector<1x64xf32>, vector<1x64xf32> -> vector<2x64xf32>
    %c0_30 = arith.constant 0 : index
    %c0_31 = arith.constant 0 : index
    %46 = vector.load %arg8[%c0_30, %c0_31] : memref<64x64xf32, #tpu.memory_space<vmem>>, vector<64x64xf32>
    %cst_32 = arith.constant dense<0.000000e+00> : vector<2x64xf32>
    %47 = tpu.matmul %45, %46, %cst_32 {dimension_numbers = #tpu.dot_dimension_numbers<[1], [0], [0], [1], [0, 0, 1, 1], [], []>} : vector<2x64xf32>, vector<64x64xf32>, vector<2x64xf32> -> vector<2x64xf32>
    %c0_33 = arith.constant 0 : index
    %c0_34 = arith.constant 0 : index
    %48 = vector.load %arg9[%c0_33, %c0_34] : memref<64x64xf32, #tpu.memory_space<vmem>>, vector<64x64xf32>
    %cst_35 = arith.constant dense<0.000000e+00> : vector<2x64xf32>
    %49 = tpu.matmul %38, %48, %cst_35 {dimension_numbers = #tpu.dot_dimension_numbers<[1], [0], [0], [1], [0, 0, 1, 1], [], []>} : vector<2x64xf32>, vector<64x64xf32>, vector<2x64xf32> -> vector<2x64xf32>
    %50 = arith.addf %47, %49 : vector<2x64xf32>
    %c6 = arith.constant 6 : index
    %c0_36 = arith.constant 0 : index
    %51 = vector.load %arg3[%c6, %c0_36] : memref<16x128xf32, #tpu.memory_space<vmem>>, vector<1x64xf32>
    %52 = vector.broadcast %51 : vector<1x64xf32> to vector<2x64xf32>
    %53 = arith.addf %50, %52 : vector<2x64xf32>
    %cst_37 = arith.constant 0.000000e+00 : f32
    %54 = vector.broadcast %cst_37 : f32 to vector<2x64xf32>
    %55 = arith.maximumf %53, %54 : vector<2x64xf32>
    %c0_38 = arith.constant 0 : index
    %c0_39 = arith.constant 0 : index
    %56 = vector.load %arg10[%c0_38, %c0_39] : memref<64x32xf32, #tpu.memory_space<vmem>>, vector<64x32xf32>
    %cst_40 = arith.constant dense<0.000000e+00> : vector<2x32xf32>
    %57 = tpu.matmul %55, %56, %cst_40 {dimension_numbers = #tpu.dot_dimension_numbers<[1], [0], [0], [1], [0, 0, 1, 1], [], []>} : vector<2x64xf32>, vector<64x32xf32>, vector<2x32xf32> -> vector<2x32xf32>
    %c7 = arith.constant 7 : index
    %c0_41 = arith.constant 0 : index
    %58 = vector.load %arg3[%c7, %c0_41] : memref<16x128xf32, #tpu.memory_space<vmem>>, vector<1x32xf32>
    %59 = vector.broadcast %58 : vector<1x32xf32> to vector<2x32xf32>
    %60 = arith.addf %57, %59 : vector<2x32xf32>
    %cst_42 = arith.constant 0.000000e+00 : f32
    %61 = vector.broadcast %cst_42 : f32 to vector<2x32xf32>
    %62 = arith.maximumf %60, %61 : vector<2x32xf32>
    %c8 = arith.constant 8 : index
    %c0_43 = arith.constant 0 : index
    %63 = vector.load %arg3[%c8, %c0_43] : memref<16x128xf32, #tpu.memory_space<vmem>>, vector<1x32xf32>
    %64 = vector.broadcast %63 : vector<1x32xf32> to vector<2x32xf32>
    %65 = arith.mulf %62, %64 : vector<2x32xf32>
    %c9 = arith.constant 9 : index
    %c0_44 = arith.constant 0 : index
    %66 = vector.load %arg3[%c9, %c0_44] : memref<16x128xf32, #tpu.memory_space<vmem>>, vector<1x32xf32>
    %67 = vector.broadcast %66 : vector<1x32xf32> to vector<2x32xf32>
    %68 = arith.addf %65, %67 : vector<2x32xf32>
    %c0_45 = arith.constant 0 : index
    %c0_46 = arith.constant 0 : index
    %69 = vector.load %arg11[%c0_45, %c0_46] : memref<32x21xf32, #tpu.memory_space<vmem>>, vector<32x21xf32>
    %cst_47 = arith.constant dense<0.000000e+00> : vector<2x21xf32>
    %70 = tpu.matmul %68, %69, %cst_47 {dimension_numbers = #tpu.dot_dimension_numbers<[1], [0], [0], [1], [0, 0, 1, 1], [], []>} : vector<2x32xf32>, vector<32x21xf32>, vector<2x21xf32> -> vector<2x21xf32>
    %c10 = arith.constant 10 : index
    %c0_48 = arith.constant 0 : index
    %71 = vector.load %arg3[%c10, %c0_48] : memref<16x128xf32, #tpu.memory_space<vmem>>, vector<1x21xf32>
    %72 = vector.broadcast %71 : vector<1x21xf32> to vector<2x21xf32>
    %73 = arith.addf %70, %72 : vector<2x21xf32>
    %cst_49 = arith.constant 0.000000e+00 : f32
    %74 = vector.broadcast %cst_49 : f32 to vector<2x75xf32>
    %75 = tpu.concatenate %73, %68, %74 in 1 : vector<2x21xf32>, vector<2x32xf32>, vector<2x75xf32> -> vector<2x128xf32>
    %cst_50 = arith.constant 0.000000e+00 : f32
    %76 = vector.broadcast %cst_50 : f32 to vector<6x128xf32>
    %77 = tpu.concatenate %75, %76 in 0 : vector<2x128xf32>, vector<6x128xf32> -> vector<8x128xf32>
    %c0_51 = arith.constant 0 : index
    %c0_52 = arith.constant 0 : index
    %78 = vector.load %arg12[%c0_51, %c0_52] : memref<8x128xf32, #tpu.memory_space<vmem>>, vector<8x128xf32>
    tpu.vector_store %arg12[%c0_51, %c0_52], %77 {strides = array<i32>} : memref<8x128xf32, #tpu.memory_space<vmem>>, vector<8x128xf32>,
    return
  }
}

</mosaic_0001>

<bundles_post_ra>
// kernel: tpu_custom_call.1
= control target key start
LH: loop header
LB: loop body
LE: loop exit
PB: predicated region body
PF: predicated region fallthrough
CT: control target
= control target key end

     0   :  { %17 = vsyncpa [#allocation3], 0  ;;  %s2019_s0 = inlined_call_operand.hbm [shape: f32[16,16], index: 0, kind: input, shape index: {}]   ;;  %s2020_s1 = inlined_call_operand.hbm [shape: f32[16,16], index: 1, kind: input, shape index: {}]   ;;  %s2021_s2 = inlined_call_operand.vmem [shape: f32[2,16], index: 2, kind: input, shape index: {}]   ;;  %s2022_s3 = inlined_call_operand.hbm [shape: f32[16,128], index: 3, kind: input, shape index: {}]   ;;  %s2023_s4 = inlined_call_operand.hbm [shape: f32[16,32], index: 4, kind: input, shape index: {}]   ;;  %s2024_s5 = inlined_call_operand.hbm [shape: f32[16,32], index: 5, kind: input, shape index: {}]   ;;  %s2025_s6 = inlined_call_operand.hbm [shape: f32[32,32], index: 6, kind: input, shape index: {}]   ;;  %s2026_s7 = inlined_call_operand.hbm [shape: f32[32,32], index: 7, kind: input, shape index: {}]   ;;  %s2027_s8 = inlined_call_operand.vmem [shape: f32[64,64], index: 8, kind: input, shape index: {}]   ;;  %s2028_s9 = inlined_call_operand.vmem [shape: f32[64,64], index: 9, kind: input, shape index: {}]   ;;  %s2029_s10 = inlined_call_operand.vmem [shape: f32[64,32], index: 10, kind: input, shape index: {}]   ;;  %s2030_s11 = inlined_call_operand.vmem [shape: f32[32,21], index: 11, kind: input, shape index: {}]   ;;  %s2031_s12 = inlined_call_operand.hbm [shape: f32[8,128], index: 12, kind: output, shape index: {}]  }
   0x1   :  { %18 = vsyncpa [#allocation6], 0 }
   0x2   :  { %19 = vsyncpa [#allocation9], 0 }
   0x3   :  { %20 = vsyncpa [#allocation12], 0 }
   0x4   :  { %21 = vsyncpa [#allocation4], 0  ;;  %s1658_s21 = smov [#allocation5]   ;;  %s1659_s23 = smov [#allocation8]  }
   0x5   :  { %s39_s22 = sshll.u32 %s1658_s21, 4  ;;  %s65_s24 = sshll.u32 %s1659_s23, 4  ;;  %s40_s22 = int_to_ptr.vmem [resolvable:$true] %s39_s22  ;;  %s1738_s24 = int_to_ptr.vmem [resolvable:$true] %s65_s24 }
   0x6   :  { %s1472_s27 = scalar_lea.hbm %s2020_s1, 256 }
   0x7   :  { %p1473_p0 = scmp.ne.s32.totalorder %s2020_s1, %s1472_s27  ;;  %p1476_p1 = scmp.lt.u32.totalorder %s1472_s27, %s2020_s1 }
   0x9   :  { %p1478_p2 = pnand %p1476_p1, %p1473_p0 }
   0xb   :  { %1481 = shalt.err (!%p1478_p2)
}
   0xc   :  { %s1482_s14 = scalar_lea.vmem %s40_s22, 256  ;;  %p1487_p4 = scmp.lt.s32.totalorder %s40_s22, %s40_s22 }
   0xd   :  { %p1483_p3 = scmp.ne.s32.totalorder %s40_s22, %s1482_s14  ;;  %p1488_p5 = scmp.lt.s32.totalorder %s1482_s14, %s1482_s14 }
   0xf   :  { %p1489_p6 = por %p1488_p5, %p1487_p4 }
  0x11   :  { %p1490_p7 = pnand %p1489_p6, %p1483_p3 }
  0x13   :  { %1493 = shalt.err (!%p1490_p7)
}
  0x14   :  { %s1660_s15 = smov 128   ;;  %s1661_s16 = smov 8  }
  0x15   :  { %45 = dma.hbm_to_vmem [thread:$0]  %s2020_s1, 256, %s40_s22, [#allocation6], %s1660_s15, %s1660_s15, %s1661_s16  }
  0x16   :  { %s1494_s21 = scalar_lea.hbm %s2023_s4, 256 }
  0x17   :  { %p1495_p8 = scmp.ne.s32.totalorder %s2023_s4, %s1494_s21  ;;  %p1498_p9 = scmp.lt.u32.totalorder %s1494_s21, %s2023_s4 }
  0x19   :  { %p1500_p10 = pnand %p1498_p9, %p1495_p8 }
  0x1b   :  { %1503 = shalt.err (!%p1500_p10)
}
  0x1c   :  { %s1504_s28 = scalar_lea.vmem %s1738_s24, 256  ;;  %p1509_p12 = scmp.lt.s32.totalorder %s1738_s24, %s1738_s24 }
  0x1d   :  { %p1505_p11 = scmp.ne.s32.totalorder %s1738_s24, %s1504_s28  ;;  %p1510_p13 = scmp.lt.s32.totalorder %s1504_s28, %s1504_s28 }
  0x1f   :  { %p1511_p0 = por %p1510_p13, %p1509_p12 }
  0x21   :  { %p1512_p1 = pnand %p1511_p0, %p1505_p11 }
  0x23   :  { %1515 = shalt.err (!%p1512_p1)
}
  0x24   :  { %71 = dma.hbm_to_vmem [thread:$0]  %s2023_s4, 256, %s1738_s24, [#allocation9], %s1660_s15, %s1660_s15, %s1661_s16  }
  0x25   :  { %s1662_s29 = smov [#allocation11]   ;;  %s1663_s13 = smov [#allocation2]  }
  0x26   :  { %s89_s30 = sshll.u32 %s1662_s29, 4  ;;  %s27_s14 = sshll.u32 %s1663_s13, 4  ;;  %s90_s30 = int_to_ptr.vmem [resolvable:$true] %s89_s30  ;;  %s1775_s14 = int_to_ptr.vmem [resolvable:$true] %s27_s14 }
  0x27   :  { %s1516_s19 = scalar_lea.hbm %s2025_s6, 512 }
  0x28   :  { %p1517_p2 = scmp.ne.s32.totalorder %s2025_s6, %s1516_s19  ;;  %p1520_p3 = scmp.lt.u32.totalorder %s1516_s19, %s2025_s6 }
  0x2a   :  { %p1522_p4 = pnand %p1520_p3, %p1517_p2 }
  0x2c   :  { %1525 = shalt.err (!%p1522_p4)
}
  0x2d   :  { %s1526_s4 = scalar_lea.vmem %s90_s30, 512  ;;  %p1531_p6 = scmp.lt.s32.totalorder %s90_s30, %s90_s30 }
  0x2e   :  { %p1527_p5 = scmp.ne.s32.totalorder %s90_s30, %s1526_s4  ;;  %p1532_p7 = scmp.lt.s32.totalorder %s1526_s4, %s1526_s4 }
  0x30   :  { %p1533_p8 = por %p1532_p7, %p1531_p6 }
  0x32   :  { %p1534_p9 = pnand %p1533_p8, %p1527_p5 }
  0x34   :  { %1537 = shalt.err (!%p1534_p9)
}
  0x35   :  { %95 = dma.hbm_to_vmem [thread:$0]  %s2025_s6, 512, %s90_s30, [#allocation12], %s1660_s15, %s1660_s15, %s1661_s16  }
  0x36   :  { %s1538_s1 = scalar_lea.hbm %s2019_s0, 256 }
  0x37   :  { %p1539_p10 = scmp.ne.s32.totalorder %s2019_s0, %s1538_s1  ;;  %p1542_p11 = scmp.lt.u32.totalorder %s1538_s1, %s2019_s0 }
  0x39   :  { %p1544_p12 = pnand %p1542_p11, %p1539_p10 }
  0x3b   :  { %1547 = shalt.err (!%p1544_p12)
}
  0x3c   :  { %s1548_s18 = scalar_lea.vmem %s1775_s14, 256  ;;  %p1553_p0 = scmp.lt.s32.totalorder %s1775_s14, %s1775_s14 }
  0x3d   :  { %p1549_p13 = scmp.ne.s32.totalorder %s1775_s14, %s1548_s18  ;;  %p1554_p1 = scmp.lt.s32.totalorder %s1548_s18, %s1548_s18 }
  0x3f   :  { %p1555_p2 = por %p1554_p1, %p1553_p0 }
  0x41   :  { %p1556_p3 = pnand %p1555_p2, %p1549_p13 }
  0x43   :  { %1559 = shalt.err (!%p1556_p3)
}
  0x44   :  { %33 = dma.hbm_to_vmem [thread:$0]  %s2019_s0, 256, %s1775_s14, [#allocation3], %s1660_s15, %s1660_s15, %s1661_s16  }
  0x45   :  { %s1664_s19 = smov [#allocation7]   ;;  %s1665_s21 = smov [#allocation10]  }
  0x46   :  { %s53_s20 = sshll.u32 %s1664_s19, 4  ;;  %s77_s23 = sshll.u32 %s1665_s21, 4  ;;  %s54_s20 = int_to_ptr.vmem [resolvable:$true] %s53_s20  ;;  %s1812_s23 = int_to_ptr.vmem [resolvable:$true] %s77_s23 }
  0x47   :  { %s1560_s24 = scalar_lea.hbm %s2022_s3, 256 }
  0x48   :  { %p1561_p4 = scmp.ne.s32.totalorder %s2022_s3, %s1560_s24  ;;  %p1564_p5 = scmp.lt.u32.totalorder %s1560_s24, %s2022_s3 }
  0x4a   :  { %p1566_p6 = pnand %p1564_p5, %p1561_p4 }
  0x4c   :  { %1569 = shalt.err (!%p1566_p6)
}
  0x4d   :  { %s1570_s0 = scalar_lea.vmem %s54_s20, 256  ;;  %p1575_p8 = scmp.lt.s32.totalorder %s54_s20, %s54_s20 }
  0x4e   :  { %p1571_p7 = scmp.ne.s32.totalorder %s54_s20, %s1570_s0  ;;  %p1576_p9 = scmp.lt.s32.totalorder %s1570_s0, %s1570_s0 }
  0x50   :  { %p1577_p10 = por %p1576_p9, %p1575_p8 }
  0x52   :  { %p1578_p11 = pnand %p1577_p10, %p1571_p7 }
  0x54   :  { %1581 = shalt.err (!%p1578_p11)
}
  0x55   :  { %59 = dma.hbm_to_vmem [thread:$0]  %s2022_s3, 256, %s54_s20, [#allocation6], %s1660_s15, %s1660_s15, %s1661_s16  }
  0x56   :  { %s1582_s17 = scalar_lea.hbm %s2024_s5, 256 }
  0x57   :  { %p1583_p12 = scmp.ne.s32.totalorder %s2024_s5, %s1582_s17  ;;  %p1586_p13 = scmp.lt.u32.totalorder %s1582_s17, %s2024_s5 }
  0x59   :  { %p1588_p0 = pnand %p1586_p13, %p1583_p12 }
  0x5b   :  { %1591 = shalt.err (!%p1588_p0)
}
  0x5c   :  { %s1592_s21 = scalar_lea.vmem %s1812_s23, 256  ;;  %p1597_p2 = scmp.lt.s32.totalorder %s1812_s23, %s1812_s23 }
  0x5d   :  { %p1593_p1 = scmp.ne.s32.totalorder %s1812_s23, %s1592_s21  ;;  %p1598_p3 = scmp.lt.s32.totalorder %s1592_s21, %s1592_s21 }
  0x5f   :  { %p1599_p4 = por %p1598_p3, %p1597_p2 }
  0x61   :  { %p1600_p5 = pnand %p1599_p4, %p1593_p1 }
  0x63   :  { %1603 = shalt.err (!%p1600_p5)
}
  0x64   :  { %83 = dma.hbm_to_vmem [thread:$0]  %s2024_s5, 256, %s1812_s23, [#allocation9], %s1660_s15, %s1660_s15, %s1661_s16  }
  0x65   :  { %s1666_s25 = smov [#allocation13]   ;;  %s1604_s27 = scalar_lea.hbm %s2026_s7, 512 }
  0x66   :  { %s101_s4 = sshll.u32 %s1666_s25, 4  ;;  %p1605_p6 = scmp.ne.s32.totalorder %s2026_s7, %s1604_s27  ;;  %s102_s4 = int_to_ptr.vmem [resolvable:$true] %s101_s4 }
  0x67   :  { %p1608_p7 = scmp.lt.u32.totalorder %s1604_s27, %s2026_s7 }
  0x69   :  { %p1610_p8 = pnand %p1608_p7, %p1605_p6 }
  0x6b   :  { %1613 = shalt.err (!%p1610_p8)
}
  0x6c   :  { %s1614_s22 = scalar_lea.vmem %s102_s4, 512  ;;  %p1619_p10 = scmp.lt.s32.totalorder %s102_s4, %s102_s4 }
  0x6d   :  { %p1615_p9 = scmp.ne.s32.totalorder %s102_s4, %s1614_s22  ;;  %p1620_p11 = scmp.lt.s32.totalorder %s1614_s22, %s1614_s22 }
  0x6f   :  { %p1621_p12 = por %p1620_p11, %p1619_p10 }
  0x71   :  { %p1622_p13 = pnand %p1621_p12, %p1615_p9 }
  0x73   :  { %1625 = shalt.err (!%p1622_p13)
}
  0x74   :  { %107 = dma.hbm_to_vmem [thread:$0]  %s2026_s7, 512, %s102_s4, [#allocation12], %s1660_s15, %s1660_s15, %s1661_s16  }
  0x75   :  { %1648 = dma.done.wait [#allocation3], 256  }
  0x76   :  { %1649 = vsyncadd [#allocation3], 4294967040 }
  0x77   :  { %1650 = dma.done.wait [#allocation6], 512  }
  0x78   :  { %1651 = vsyncadd [#allocation6], 4294966784 }
  0x79   :  { %1652 = dma.done.wait [#allocation9], 512  }
  0x7a   :  { %1653 = vsyncadd [#allocation9], 4294966784 }
  0x7b   :  { %1654 = dma.done.wait [#allocation12], 1024  }
  0x7c   :  { %1655 = vsyncadd [#allocation12], 4294966272  ;;  %vm141_vm0 = vcmask 130048   ;;  %v137_v0 = vld [vmem:[#allocation2] sm:$0xff]  ;;  %v138_v1 = vld [vmem:[#allocation2 + $0x8] sm:$0xff]  ;;  %vm495_vm1 = vcmask 261120  }
  0x7d   :  { %v139_v2 = vld [vmem:[#allocation5] sm:$0xff]  ;;  %v1376_v3 = vpack.c.bf16 %v138_v1, %v137_v0  ;;  %v225_v4 = vld [vmem:[#allocation10] sm:$0xff]  ;;  %v226_v5 = vld [vmem:[#allocation10 + $0x8] sm:$0xff]  ;;  %1262 = vmatprep.mubr.msk.f32.mxu1 %vm141_vm0, %v137_v0  ;;  %v1667_v46 = vmov 0.0|0.0   ;;  %vm1668_vm2 = vmmov 0   ;;  %v1669_v58 = vmov 0.0  }
  0x7e   :  { %1255 = vmatprep.mubr.msk.f32.mxu0 %vm141_vm0, %v139_v2  ;;  %v1380_v6 = vpack.c.bf16 %v226_v5, %v225_v4  ;;  %v223_v7 = vld [vmem:[#allocation8] sm:$0xff]  ;;  %v224_v8 = vld [vmem:[#allocation8 + $0x8] sm:$0xff]  ;;  %v1166_v13 = vld [vmem:[#allocation7] ss:$0 sm:$0xff]  ;;  %s1670_s20 = smov 32   ;;  %vm765_vm3 = vcmask 523264  }
  0x7f   :  { %1377 = vmatprep.subr.bf16.mxu0 %v1376_v3  ;;  %v1384_v9 = vpack.c.bf16 %v224_v8, %v223_v7  ;;  %v140_v10 = vld [vmem:[#allocation5 + $0x8] sm:$0xff]  ;;  %v1167_v17 = vld [vmem:[#allocation7 + $0x1] ss:$0 sm:$0xff]  ;;  %v1168_v20 = vld [vmem:[#allocation7 + $0x2] ss:$0 sm:$0xff]  ;;  %vm780_vm4 = vcmask 1040384  }
  0x80   :  { %1379 = vmatpush3.bf16.msra.mxu0 %v1376_v3  ;;  %1381 = vmatprep.subr.bf16.mxu1 %v1380_v6  ;;  %v491_v25 = vld [vmem:[#allocation13] sm:$0xff]  ;;  %v492_v26 = vld [vmem:[#allocation13 + $0x8] sm:$0xff]  ;;  %v493_v30 = vld [vmem:[#allocation13 + $0x10] sm:$0xff]  ;;  %s1671_s29 = smov 21   ;;  %vm1135_vm5 = vcmask 171008   ;;  %vm1137_vm6 = vcmask 433152  }
  0x81   :  { %1383 = vmatpush3.bf16.msra.mxu1 %v1380_v6  ;;  %v1392_v29 = vpack.c.bf16 %v492_v26, %v491_v25  ;;  %v494_v31 = vld [vmem:[#allocation13 + $0x18] sm:$0xff]  ;;  %v487_v33 = vld [vmem:[#allocation11] sm:$0xff]  ;;  %v488_v34 = vld [vmem:[#allocation11 + $0x8] sm:$0xff]  ;;  %vm1139_vm7 = vcmask 1041408  }
  0x82   :  { %1385 = vmatprep.subr.bf16.mxu1 %v1384_v9  ;;  %v1396_v32 = vpack.c.bf16 %v494_v31, %v493_v30  ;;  %v1400_v35 = vpack.c.bf16 %v488_v34, %v487_v33  ;;  %v489_v36 = vld [vmem:[#allocation11 + $0x10] sm:$0xff]  ;;  %v490_v37 = vld [vmem:[#allocation11 + $0x18] sm:$0xff]  ;;  %v784_v50 = vld [vmem:[%s2027_s8 + $0x10] sm:$0xff] }
  0x83   :  { %1256 = vmatmul.mubr.msk.f32.vlgmr.msra.gmra.mrb[0].mxu0 %vm141_vm0, %v140_v10  ;;  %v1404_v38 = vpack.c.bf16 %v490_v37, %v489_v36  ;;  %v1175_v41 = vld [vmem:[#allocation7 + $0x3] ss:$0 sm:$0xff]  ;;  %v783_v43 = vld [vmem:[%s2027_s8 + $0x8] sm:$0xff]  ;;  %v785_v51 = vld [vmem:[%s2027_s8 + $0x18] sm:$0xff] }
  0x84   :  { %1263 = vmatmul.mubr.msk.f32.vlgmr.msra.gmra.mrb[0].mxu1 %vm141_vm0, %v138_v1  ;;  %1276 = vmatprep.mubr.msk.f32.mxu0 %vm141_vm0, %v139_v2  ;;  %v782_v42 = vld [vmem:[%s2027_s8] sm:$0xff]  ;;  %v1427_v53 = vpack.c.bf16 %v785_v51, %v784_v50  ;;  %v787_v60 = vld [vmem:[%s2027_s8 + $0x28] sm:$0xff]  ;;  %v788_v0 = vld [vmem:[%s2027_s8 + $0x30] sm:$0xff] }
  0x85   :  { %1387 = vmatpush3.bf16.msra.mxu1 %v1384_v9  ;;  %v1424_v44 = vpack.c.bf16 %v783_v43, %v782_v42  ;;  %v1176_v52 = vld [vmem:[#allocation7 + $0x4] ss:$0 sm:$0xff]  ;;  %v1177_v56 = vld [vmem:[#allocation7 + $0x5] ss:$0 sm:$0xff]  ;;  %v789_v1 = vld [vmem:[%s2027_s8 + $0x38] sm:$0xff] }
  0x86   :  { %1408 = vmatprep.subr.bf16.mxu1 %v1667_v46  ;;  %v786_v59 = vld [vmem:[%s2027_s8 + $0x20] sm:$0xff]  ;;  %v1433_v2 = vpack.c.bf16 %v789_v1, %v788_v0  ;;  %v796_v33 = vld [vmem:[%s2028_s9 + $0x30] sm:$0xff]  ;;  %v797_v34 = vld [vmem:[%s2028_s9 + $0x38] sm:$0xff] }
  0x87   :  { %v1430_v61 = vpack.c.bf16 %v787_v60, %v786_v59  ;;  %v1421_v36 = vpack.c.bf16 %v797_v34, %v796_v33  ;;  %v951_v37 = vld [vmem:[%s2029_s10] sm:$0xff]  ;;  %v957_v51 = vld [vmem:[%s2029_s10 + $0x30] sm:$0xff]  ;;  %v1053_v0 = vld [vmem:[%s2030_s11 + $0x18] sm:$0xff] }
  0x88   :  { %v1050_v60 = vld [vmem:[%s2030_s11] sm:$0xff] }
 0x156   :  { %v1257_v11 = vpop.f32.mrb[0].mxu0 }
 0x157   :  { %v214_v12 = vpop.f32.mrb[1].mxu0 }
 0x158   :  { %1269 = vmatprep.mubr.msk.f32.mxu1 %vm141_vm0, %v214_v12  ;;  %v791_v12 = vld [vmem:[%s2028_s9 + $0x8] sm:$0xff] }
 0x159   :  { %1270 = vmatmul.mubr.msk.f32.vlgmr.msra.gmra.mrb[0].mxu1 %vm141_vm0, %v1257_v11  ;;  %v790_v11 = vld [vmem:[%s2028_s9] sm:$0xff] }
 0x15a   :  { %1305 = vmatprep.mubr.msk.f32.mxu1 %vm1668_vm2, %v1669_v58 }
 0x22c   :  { %v1271_v14 = vpop.f32.mrb[0].mxu1 }
 0x22d   :  { %v395_v15 = vadd.f32 %v1271_v14, %v1166_v13  ;;  %v380_v16 = vpop.f32.mrb[1].mxu1 }
 0x22e   :  { %v394_v18 = vadd.f32 %v1166_v13, %v380_v16 }
 0x22f   :  { %v397_v19 = vmax.f32 %v395_v15, 0.0 }
 0x230   :  { %v396_v21 = vmax.f32 %v394_v18, 0.0  ;;  %v1412_v18 = vpack.c.bf16 %v791_v12, %v790_v11 }
 0x231   :  { %v404_v22 = vmul.f32 %v1167_v17, %v397_v19 }
 0x232   :  { %v403_v23 = vmul.f32 %v1167_v17, %v396_v21  ;;  %v691_v17 = vld [vmem:[%s2021_s2] sm:$0x3]  ;;  %v792_v21 = vld [vmem:[%s2028_s9 + $0x10] sm:$0xff] }
 0x233   :  { %v1871_v24 = vadd.f32 %v1168_v20, %v404_v22  ;;  %v793_v22 = vld [vmem:[%s2028_s9 + $0x18] sm:$0xff] }
 0x234   :  { %v1873_v27 = vadd.f32 %v1168_v20, %v403_v23 }
 0x236   :  { %v1388_v28 = vpack.c.bf16 %v1871_v24, %v1873_v27 }
 0x238   :  { %1389 = vmatprep.subr.bf16.mxu0 %v1388_v28 }
 0x239   :  { %1391 = vmatpush3.bf16.msra.mxu0 %v1388_v28  ;;  %v795_v28 = vld [vmem:[%s2028_s9 + $0x28] sm:$0xff] }
 0x23a   :  { %1393 = vmatprep.subr.bf16.mxu0 %v1392_v29 }
 0x23c   :  { %1277 = vmatmul.mubr.msk.f32.vlgmr.msra.gmra.mrb[2].mxu0 %vm141_vm0, %v140_v10 }
 0x23d   :  { %1395 = vmatpush3.bf16.msra.mxu0 %v1392_v29  ;;  %1287 = vmatprep.mubr.msk.f32.mxu0 %vm495_vm1, %v1873_v27 }
 0x23e   :  { %1397 = vmatprep.subr.bf16.mxu0 %v1396_v32 }
 0x241   :  { %1399 = vmatpush3.bf16.msra.mxu0 %v1396_v32 }
 0x242   :  { %1401 = vmatprep.subr.bf16.mxu0 %v1400_v35 }
 0x244   :  { %1288 = vmatmul.mubr.msk.f32.vlgmr.msra.gmra.mrb[4].mxu0 %vm495_vm1, %v1871_v24 }
 0x245   :  { %1403 = vmatpush3.bf16.msra.mxu0 %v1400_v35 }
 0x246   :  { %1405 = vmatprep.subr.bf16.mxu0 %v1404_v38 }
 0x249   :  { %1407 = vmatpush3.bf16.msra.mxu0 %v1404_v38  ;;  %v952_v38 = vld [vmem:[%s2029_s10 + $0x8] sm:$0xff] }
 0x24a   :  { %1423 = vmatprep.subr.bf16.mxu0 %v1667_v46 }
 0x30f   :  { %v1278_v39 = vpop.f32.mrb[2].mxu0 }
 0x310   :  { %v478_v40 = vpop.f32.mrb[3].mxu0 }
 0x311   :  { %1298 = vmatprep.mubr.msk.f32.mxu0 %vm495_vm1, %v478_v40  ;;  %v953_v40 = vld [vmem:[%s2029_s10 + $0x10] sm:$0xff] }
 0x312   :  { %1299 = vmatmul.mubr.msk.f32.vlgmr.msra.gmra.mrb[4].mxu0 %vm495_vm1, %v1278_v39  ;;  %v1436_v39 = vpack.c.bf16 %v952_v38, %v951_v37 }
 0x313   :  { %1425 = vmatpush3.bf16.msra.mxu0 %v1424_v44  ;;  %1343 = vmatprep.mubr.msk.f32.mxu0 %vm1668_vm2, %v1669_v58 }
 0x314   :  { %1426 = vmatprep.subr.bf16.mxu0 %v1667_v46 }
 0x317   :  { %1428 = vmatpush3.bf16.msra.mxu0 %v1427_v53 }
 0x318   :  { %1429 = vmatprep.subr.bf16.mxu0 %v1667_v46 }
 0x31b   :  { %1431 = vmatpush3.bf16.msra.mxu0 %v1430_v61  ;;  %v1051_v61 = vld [vmem:[%s2030_s11 + $0x8] sm:$0xff] }
 0x31c   :  { %1432 = vmatprep.subr.bf16.mxu0 %v1667_v46 }
 0x31f   :  { %1434 = vmatpush3.bf16.msra.mxu0 %v1433_v2  ;;  %v1182_v2 = vld [vmem:[#allocation7 + $0x7] ss:$0 sm:$0xff] }
 0x320   :  { %1447 = vmatprep.subr.bf16.mxu0 %v1667_v46 }
 0x3e5   :  { %v1300_v45 = vpop.f32.mrb[4].mxu0 }
 0x3e6   :  { %v664_v47 = vadd.f32 %v1300_v45, %v1175_v41  ;;  %v649_v48 = vpop.f32.mrb[5].mxu0 }
 0x3e7   :  { %v663_v49 = vadd.f32 %v1175_v41, %v649_v48  ;;  %v954_v41 = vld [vmem:[%s2029_s10 + $0x18] sm:$0xff]  ;;  %v955_v48 = vld [vmem:[%s2029_s10 + $0x20] sm:$0xff] }
 0x3e8   :  { %v666_v54 = vmax.f32 %v664_v47, 0.0  ;;  %v1439_v44 = vpack.c.bf16 %v954_v41, %v953_v40 }
 0x3e9   :  { %v665_v55 = vmax.f32 %v663_v49, 0.0  ;;  %v956_v49 = vld [vmem:[%s2029_s10 + $0x28] sm:$0xff] }
 0x3ea   :  { %v673_v62 = vmul.f32 %v1176_v52, %v666_v54  ;;  %v1442_v50 = vpack.c.bf16 %v956_v49, %v955_v48 }
 0x3eb   :  { %v672_v57 = vmul.f32 %v1176_v52, %v665_v55  ;;  %v958_v52 = vld [vmem:[%s2029_s10 + $0x38] sm:$0xff]  ;;  %v1181_v55 = vld [vmem:[#allocation7 + $0x6] ss:$0 sm:$0xff] }
 0x3ec   :  { %v680_v3 = vadd.f32 %v1177_v56, %v673_v62  ;;  %v1445_v53 = vpack.c.bf16 %v958_v52, %v957_v51  ;;  %v1448_v62 = vpack.c.bf16 %v1051_v61, %v1050_v60 }
 0x3ed   :  { %v679_v63 = vadd.f32 %v1177_v56, %v672_v57 }
 0x3ef   :  { %683 = vrot.lane.b32.xlu0 %v679_v63, %s1670_s20  ;;  %v1052_v63 = vld [vmem:[%s2030_s11 + $0x10] sm:$0xff]  ;;  %s1672_s11 = smov [#allocation14]  }
 0x3f0   :  { %v1451_v1 = vpack.c.bf16 %v1053_v0, %v1052_v63  ;;  %s1148_s13 = sshll.u32 %s1672_s11, 4  ;;  %s1149_s13 = int_to_ptr.vmem [resolvable:$true] %s1148_s13 }
 0x3f1   :  { %s1626_s17 = scalar_lea.vmem %s1149_s13, 128  ;;  %p1631_p1 = scmp.lt.s32.totalorder %s1149_s13, %s1149_s13 }
 0x3f2   :  { %p1627_p0 = scmp.ne.s32.totalorder %s1149_s13, %s1626_s17  ;;  %p1632_p2 = scmp.lt.s32.totalorder %s1626_s17, %s1626_s17 }
 0x3f3   :  { %685 = vrot.lane.b32.xlu0 %v680_v3, %s1670_s20 }
 0x3f4   :  { %p1633_p3 = por %p1632_p2, %p1631_p1 }
 0x3f6   :  { %p1634_p4 = pnand %p1633_p3, %p1627_p0 }
 0x461   :  { %v684_v4 = vpop.permute.xlu0 %683 }
 0x462   :  { %v689_v5 = vsel %vm495_vm1, %v1873_v27, %v684_v4  ;;  %v794_v27 = vld [vmem:[%s2028_s9 + $0x20] sm:$0xff] }
 0x463   :  { %v766_v6 = vsel %vm765_vm3, %v689_v5, -inf  ;;  %v1418_v30 = vpack.c.bf16 %v795_v28, %v794_v27 }
 0x464   :  { %v767_v7 = vrot.slane %v766_v6, 4 }
 0x465   :  { %v686_v8 = vpop.permute.xlu0 %685 }
 0x466   :  { %v768_v9 = vmax.f32 %v766_v6, %v767_v7  ;;  %v690_v10 = vsel %vm495_vm1, %v1871_v24, %v686_v8  ;;  %v1415_v24 = vpack.c.bf16 %v793_v22, %v792_v21  ;;  %v1184_v6 = vld [vmem:[#allocation7 + $0x8] ss:$0 sm:$0xff]  ;;  %v1185_v8 = vld [vmem:[#allocation7 + $0x9] ss:$0 sm:$0xff] }
 0x467   :  { %v1409_v13 = vpack.c.bf16 %v690_v10, %v689_v5  ;;  %v773_v14 = vsel %vm765_vm3, %v690_v10, -inf }
 0x468   :  { %v769_v15 = vrot.slane %v768_v9, 2  ;;  %v774_v16 = vrot.slane %v773_v14, 4 }
 0x469   :  { %1410 = vmatpush3.bf16.msra.mxu1 %v1409_v13 }
 0x46a   :  { %v770_v19 = vmax.f32 %v768_v9, %v769_v15  ;;  %v775_v20 = vmax.f32 %v773_v14, %v774_v16  ;;  %1411 = vmatprep.subr.bf16.mxu1 %v1667_v46 }
 0x46c   :  { %v776_v23 = vrot.slane %v775_v20, 2  ;;  %1306 = vmatmul.mubr.msk.f32.vlgmr.msra.gmra.mrb[2].mxu1 %vm141_vm0, %v691_v17  ;;  %v771_v25 = vrot.slane %v770_v19, 1 }
 0x46d   :  { %1413 = vmatpush3.bf16.msra.mxu1 %v1412_v18  ;;  %1324 = vmatprep.mubr.msk.f32.mxu1 %vm1668_vm2, %v1669_v58 }
 0x46e   :  { %v777_v26 = vmax.f32 %v775_v20, %v776_v23  ;;  %1414 = vmatprep.subr.bf16.mxu1 %v1667_v46  ;;  %v772_v31 = vmax.f32 %v770_v19, %v771_v25 }
 0x470   :  { %v778_v29 = vrot.slane %v777_v26, 1 }
 0x471   :  { %1416 = vmatpush3.bf16.msra.mxu1 %v1415_v24 }
 0x472   :  { %v779_v32 = vmax.f32 %v777_v26, %v778_v29  ;;  %1417 = vmatprep.subr.bf16.mxu1 %v1667_v46 }
 0x474   :  { %v781_v35 = vsel %vm780_vm4, %v772_v31, %v779_v32 }
 0x475   :  { %1344 = vmatmul.mubr.msk.f32.vlgmr.msra.gmra.mrb[6].mxu0 %vm765_vm3, %v781_v35  ;;  %1419 = vmatpush3.bf16.msra.mxu1 %v1418_v30 }
 0x476   :  { %1420 = vmatprep.subr.bf16.mxu1 %v1667_v46  ;;  %1373 = vmatprep.mubr.msk.f32.mxu0 %vm1668_vm2, %v1669_v58 }
 0x477   :  { %1449 = vmatpush3.bf16.msra.mxu0 %v1448_v62 }
 0x478   :  { %1450 = vmatprep.subr.bf16.mxu0 %v1667_v46 }
 0x479   :  { %1422 = vmatpush3.bf16.msra.mxu1 %v1421_v36 }
 0x47a   :  { %1435 = vmatprep.subr.bf16.mxu1 %v1667_v46 }
 0x47b   :  { %1452 = vmatpush3.bf16.msra.mxu0 %v1451_v1 }
 0x53f   :  { %v761_v42 = vpop.f32.mrb[2].mxu1 }
 0x540   :  { %v1307_v43 = vpop.f32.mrb[3].mxu1  ;;  %1325 = vmatmul.mubr.msk.f32.vlgmr.msra.gmra.mrb[4].mxu1 %vm765_vm3, %v761_v42 }
 0x541   :  { %1437 = vmatpush3.bf16.msra.mxu1 %v1436_v39  ;;  %1362 = vmatprep.mubr.msk.f32.mxu1 %vm1668_vm2, %v1669_v58 }
 0x542   :  { %1438 = vmatprep.subr.bf16.mxu1 %v1667_v46 }
 0x545   :  { %1440 = vmatpush3.bf16.msra.mxu1 %v1439_v44 }
 0x546   :  { %1441 = vmatprep.subr.bf16.mxu1 %v1667_v46 }
 0x548   :  { %v940_v45 = vpop.f32.mrb[6].mxu0 }
 0x549   :  { %v1345_v47 = vpop.f32.mrb[7].mxu0  ;;  %1443 = vmatpush3.bf16.msra.mxu1 %v1442_v50 }
 0x54a   :  { %1444 = vmatprep.subr.bf16.mxu1 %v1667_v46  ;;  %v1186_v46 = vld [vmem:[#allocation7 + $0xa] ss:$0 sm:$0xff] }
 0x54d   :  { %1446 = vmatpush3.bf16.msra.mxu1 %v1445_v53 }
 0x613   :  { %v867_v54 = vpop.f32.mrb[4].mxu1 }
 0x614   :  { %v941_v56 = vadd.f32 %v940_v45, %v867_v54  ;;  %v1326_v57 = vpop.f32.mrb[5].mxu1 }
 0x616   :  { %v949_v58 = vadd.f32 %v1181_v55, %v941_v56 }
 0x618   :  { %v950_v59 = vmax.f32 %v949_v58, 0.0 }
 0x61a   :  { %1363 = vmatmul.mubr.msk.f32.vlgmr.msra.gmra.mrb[6].mxu1 %vm765_vm3, %v950_v59 }
 0x6ed   :  { %v1033_v3 = vpop.f32.mrb[6].mxu1 }
 0x6ee   :  { %v1034_v4 = vadd.f32 %v1182_v2, %v1033_v3  ;;  %v1364_v5 = vpop.f32.mrb[7].mxu1 }
 0x6f0   :  { %v1037_v7 = vmax.f32 %v1034_v4, 0.0 }
 0x6f2   :  { %v1043_v9 = vmul.f32 %v1184_v6, %v1037_v7 }
 0x6f4   :  { %v1049_v10 = vadd.f32 %v1185_v8, %v1043_v9 }
 0x6f6   :  { %1132 = vrot.lane.b32.xlu1 %v1049_v10, %s1671_s29  ;;  %1374 = vmatmul.mubr.msk.f32.vlgmr.msra.gmra.mrb[8].mxu0 %vm495_vm1, %v1049_v10 }
 0x768   :  { %v1133_v14 = vpop.permute.xlu1 %1132 }
 0x7c9   :  { %v1128_v11 = vpop.f32.mrb[8].mxu0 }
 0x7ca   :  { %v1129_v12 = vadd.f32 %v1186_v46, %v1128_v11  ;;  %v1375_v13 = vpop.f32.mrb[9].mxu0 }
 0x7cc   :  { %v1136_v15 = vsel %vm1135_vm5, %v1129_v12, %v1133_v14 }
 0x7cd   :  { %v1138_v16 = vsel %vm1137_vm6, %v1136_v15, 0.0 }
 0x7ce   :  { %v1140_v17 = vsel %vm1139_vm7, %v1138_v16, 0.0 }
 0x7cf   :  { %1141 = vst [vmem:[#allocation14] sm:$0xff] %v1140_v17 }
 0x7d0   :  { %1637 = shalt.err (!%p1634_p4)
}
 0x7d1   :  { %s1638_s30 = scalar_lea.hbm %s2031_s12, 128 }
 0x7d2   :  { %p1639_p5 = scmp.ne.s32.totalorder %s2031_s12, %s1638_s30  ;;  %p1642_p6 = scmp.lt.u32.totalorder %s1638_s30, %s2031_s12 }
 0x7d4   :  { %p1644_p7 = pnand %p1642_p6, %p1639_p5 }
 0x7d6   :  { %1647 = shalt.err (!%p1644_p7)
}
 0x7d7   :  { %1151 = dma.vmem_to_hbm [thread:$0]  %s1149_s13, 128, %s2031_s12, [#allocation4]  }
 0x7d8   :  { %1656 = dma.done.wait [#allocation4], 128  }
 0x7d9   :  { %1657 = vsyncadd [#allocation4], 4294967168 }
 0x7da   :  { %1155 = vsyncpa [#allocation3], 1 }
 0x7db   :  { %1156 = vsyncpa [#allocation6], 1 }
 0x7dc   :  { %1157 = vsyncpa [#allocation9], 1 }
 0x7dd   :  { %1158 = vsyncpa [#allocation12], 1 }
 0x7de   :  { %1159 = vsyncpa [#allocation4], 1 }

</bundles_post_ra>
